<compile_context>
chip_gen: v7x
topology: tpu7x:2x2x1
jax: 0.10.0
libtpu: 0.0.40
codegen_flags: <defaults>
</compile_context>

<pallas_src>
import functools

import jax
import jax.numpy as jnp
import numpy as np
from jax.experimental import pallas as pl
from jax.experimental.pallas import tpu as pltpu

LANE = 128            # pad all feature dims to a multiple of the lane width
DEFAULT_TILE_B = 256  # batch tile (amortizes ~0.35 us/step grid overhead)


def _round_up(x, m):
    return ((x + m - 1) // m) * m


# ----------------------------------------------------------------------------
# Kernel builder (handles 3- and 4-layer variants; layer count is static)
# ----------------------------------------------------------------------------
def _make_actor_kernel(n_layers, compute_dtype):
    """Kernel signature: x_ref, (w_ref, b_ref) * n_layers, o_ref.

    Matmuls run in `compute_dtype` on the MXU with f32 accumulation; the
    epilogue (bias add, relu, tanh) stays f32 on every layer.
    """

    def kernel(x_ref, *refs):
        o_ref = refs[-1]
        h = x_ref[...]
        for l in range(n_layers):
            w_ref = refs[2 * l]
            b_ref = refs[2 * l + 1]
            h = jnp.dot(h.astype(compute_dtype), w_ref[...],
                        preferred_element_type=jnp.float32) + b_ref[...]
            if l < n_layers - 1:
                h = jnp.maximum(h, 0.0)          # relu, f32 VPU
            else:
                h = jnp.tanh(h)                  # tanh, f32 EUP
        o_ref[...] = h.astype(o_ref.dtype)

    return kernel


# ----------------------------------------------------------------------------
# Wrapper
# ----------------------------------------------------------------------------
@functools.partial(jax.jit,
                   static_argnames=("action_dim", "use_bf16", "tile_b"))
def actor_forward(x, padded_params, *, action_dim, use_bf16=False,
                  tile_b=DEFAULT_TILE_B):
    """Runs the ActorNetwork forward pass via a batch-tiled pallas_call.

    x:             [batch, state_dim] float32 (unpadded, logical shape)
    padded_params: dict of 128-padded weights ([in_p, out_p]) / biases ([1, out_p])
    """
    batch, state_dim = x.shape
    n_layers = 4 if "w4" in padded_params else 3
    compute_dtype = jnp.bfloat16 if use_bf16 else jnp.float32

    state_pad = padded_params["w1"].shape[0]
    action_pad = padded_params[f"w{n_layers}"].shape[1]

    # Batch tiling: keep tiles (8,128)-aligned and pad the batch to a whole
    # number of tiles so every grid step sees a full, lane-dense block.
    tile_b_eff = min(tile_b, _round_up(batch, 8))
    pb = _round_up(batch, tile_b_eff)
    grid = (pb // tile_b_eff,)

    x_pad = jnp.pad(x, ((0, pb - batch), (0, state_pad - state_dim)))
    x_pad = x_pad.astype(compute_dtype)

    # Assemble args + BlockSpecs.  x/out are tiled over batch; every weight /
    # bias uses a constant index_map so it stays resident in VMEM across tiles.
    args = [x_pad]
    in_specs = [pl.BlockSpec((tile_b_eff, state_pad), lambda i: (i, 0))]
    flops = 0
    param_bytes = 0
    for l in range(1, n_layers + 1):
        w = padded_params[f"w{l}"]
        b = padded_params[f"b{l}"]
        args.append(w.astype(compute_dtype))
        args.append(b)  # bias stays f32 (f32 epilogue)
        in_specs.append(pl.BlockSpec(w.shape, lambda i: (0, 0)))
        in_specs.append(pl.BlockSpec((1, w.shape[1]), lambda i: (0, 0)))
        flops += 2 * pb * w.shape[0] * w.shape[1]
        param_bytes += (w.size * jnp.dtype(compute_dtype).itemsize
                        + b.size * 4)

    out_spec = pl.BlockSpec((tile_b_eff, action_pad), lambda i: (i, 0))
    out_shape = jax.ShapeDtypeStruct((pb, action_pad), jnp.float32)

    bytes_accessed = (x_pad.size * x_pad.dtype.itemsize
                      + param_bytes
                      + pb * action_pad * 4)

    out = pl.pallas_call(
        _make_actor_kernel(n_layers, compute_dtype),
        out_shape=out_shape,
        grid=grid,
        in_specs=in_specs,
        out_specs=out_spec,
        compiler_params=pltpu.CompilerParams(
            dimension_semantics=("parallel",),   # shard batch tiles across TCs
            vmem_limit_bytes=32 << 20,           # stay within v7x scoped VMEM
        ),
        cost_estimate=pl.CostEstimate(
            flops=flops,
            transcendentals=pb * action_pad,
            bytes_accessed=bytes_accessed,
        ),
    )(*args)

    return out[:batch, :action_dim]


# ----------------------------------------------------------------------------
# Parameter init (mirrors the PyTorch module's init ranges) + 128-padding
# ----------------------------------------------------------------------------
def init_actor_params(key, state_dim, action_dim, fc1_dim, fc2_dim, fc3_dim):
    """Logical (unpadded) params. Weights [in, out]; biases [1, out].

    hidden_init() in the reference uses weight.size()[0] == out_features for a
    PyTorch nn.Linear, so lim = 1/sqrt(out_features).  Biases keep PyTorch's
    default nn.Linear range 1/sqrt(in_features).
    """
    keys = jax.random.split(key, 10)

    def uniform(k, shape, lim):
        return jax.random.uniform(k, shape, jnp.float32, -lim, lim)

    params = {}
    params["w1"] = uniform(keys[0], (state_dim, fc1_dim), 1.0 / np.sqrt(fc1_dim))
    params["b1"] = uniform(keys[1], (1, fc1_dim), 1.0 / np.sqrt(state_dim))

    params["w2"] = uniform(keys[2], (fc1_dim, fc2_dim), 1.0 / np.sqrt(fc2_dim))
    params["b2"] = uniform(keys[3], (1, fc2_dim), 1.0 / np.sqrt(fc1_dim))

    if fc3_dim != 0:
        params["w3"] = uniform(keys[4], (fc2_dim, fc3_dim), 1.0 / np.sqrt(fc3_dim))
        params["b3"] = uniform(keys[5], (1, fc3_dim), 1.0 / np.sqrt(fc2_dim))
        params["w4"] = uniform(keys[6], (fc3_dim, action_dim), 0.003)
        params["b4"] = uniform(keys[7], (1, action_dim), 1.0 / np.sqrt(fc3_dim))
    else:
        params["w3"] = uniform(keys[4], (fc2_dim, action_dim), 0.003)
        params["b3"] = uniform(keys[5], (1, action_dim), 1.0 / np.sqrt(fc2_dim))

    return params


def pad_actor_params(params, lane=LANE):
    """Zero-pad every layer's [in, out] dims up to multiples of `lane`.

    Exact: padded hidden columns stay 0 through relu; padded output columns
    are sliced off in the wrapper.
    """
    n_layers = 4 if "w4" in params else 3
    padded = {}
    for l in range(1, n_layers + 1):
        w = params[f"w{l}"]
        b = params[f"b{l}"]
        din, dout = w.shape
        pin, pout = _round_up(din, lane), _round_up(dout, lane)
        padded[f"w{l}"] = jnp.pad(w, ((0, pin - din), (0, pout - dout)))
        padded[f"b{l}"] = jnp.pad(b, ((0, 0), (0, pout - dout)))
    return padded


# ----------------------------------------------------------------------------
# Pure-JAX reference for verification
# ----------------------------------------------------------------------------
def actor_ref(x, params):
    h = jax.nn.relu(x @ params["w1"] + params["b1"])
    h = jax.nn.relu(h @ params["w2"] + params["b2"])
    if "w4" in params:
        h = jax.nn.relu(h @ params["w3"] + params["b3"])
        return jnp.tanh(h @ params["w4"] + params["b4"])
    return jnp.tanh(h @ params["w3"] + params["b3"])


if __name__ == "__main__":
    # Small, module-consistent shapes.
    batch, state_dim, action_dim = 4, 16, 8
    fc1_dim, fc2_dim, fc3_dim = 32, 32, 32

    key = jax.random.PRNGKey(0)
    kx, kp, kb = jax.random.split(key, 3)

    x = jax.random.normal(kx, (batch, state_dim), dtype=jnp.float32)

    # --- 4-layer path (fc3_dim > 0), f32 compute: exact vs reference -------
    params = init_actor_params(kp, state_dim, action_dim,
                               fc1_dim, fc2_dim, fc3_dim)
    padded = pad_actor_params(params)

    out = jax.block_until_ready(actor_forward(x, padded, action_dim=action_dim))
    ref = actor_ref(x, params)
    np.testing.assert_allclose(np.asarray(out), np.asarray(ref),
                               rtol=1e-5, atol=1e-5)

    # --- 3-layer path (fc3_dim == 0), f32 compute ---------------------------
    params0 = init_actor_params(kp, state_dim, action_dim,
                                fc1_dim, fc2_dim, 0)
    padded0 = pad_actor_params(params0)
    out0 = jax.block_until_ready(
        actor_forward(x, padded0, action_dim=action_dim))
    np.testing.assert_allclose(np.asarray(out0),
                               np.asarray(actor_ref(x, params0)),
                               rtol=1e-5, atol=1e-5)

    # --- bf16-on-MXU path (f32 accumulation + epilogue): relaxed tolerance --
    out_bf16 = jax.block_until_ready(
        actor_forward(x, padded, action_dim=action_dim, use_bf16=True))
    np.testing.assert_allclose(np.asarray(out_bf16), np.asarray(ref),
                               rtol=2e-2, atol=2e-2)

    # --- multi-tile batch path: exercises grid > 1, ragged last tile --------
    batch_big = 260
    xb = jax.random.normal(kb, (batch_big, state_dim), dtype=jnp.float32)
    out_big = jax.block_until_ready(
        actor_forward(xb, padded, action_dim=action_dim, tile_b=128))
    np.testing.assert_allclose(np.asarray(out_big),
                               np.asarray(actor_ref(xb, params)),
                               rtol=1e-5, atol=1e-5)

    print("KERNEL_OK")
</pallas_src>

<mosaic_0001>
module attributes {stable_mosaic.version = 11 : i64} {
  func.func @kernel(%arg0: i32, %arg1: memref<8x128xf32, #tpu.memory_space<vmem>>, %arg2: memref<128x128xf32, #tpu.memory_space<vmem>>, %arg3: memref<1x128xf32, #tpu.memory_space<vmem>>, %arg4: memref<128x128xf32, #tpu.memory_space<vmem>>, %arg5: memref<1x128xf32, #tpu.memory_space<vmem>>, %arg6: memref<128x128xf32, #tpu.memory_space<vmem>>, %arg7: memref<1x128xf32, #tpu.memory_space<vmem>>, %arg8: memref<128x128xf32, #tpu.memory_space<vmem>>, %arg9: memref<1x128xf32, #tpu.memory_space<vmem>>, %arg10: memref<8x128xf32, #tpu.memory_space<vmem>>) attributes {dimension_semantics = [#tpu.dimension_semantics<parallel>], iteration_bounds = array<i64: 1>, scalar_prefetch = 0 : i64, scratch_operands = 0 : i64, tpu.core_type = #tpu.core_type<tc>, window_params = [{transform_indices = @transform_0, window_bounds = array<i64: 8, 128>}, {pipeline_mode = #tpu.pipeline_mode<synchronous>, transform_indices = @transform_1, window_bounds = array<i64: 128, 128>}, {pipeline_mode = #tpu.pipeline_mode<synchronous>, transform_indices = @transform_2, window_bounds = array<i64: 1, 128>}, {pipeline_mode = #tpu.pipeline_mode<synchronous>, transform_indices = @transform_3, window_bounds = array<i64: 128, 128>}, {pipeline_mode = #tpu.pipeline_mode<synchronous>, transform_indices = @transform_4, window_bounds = array<i64: 1, 128>}, {pipeline_mode = #tpu.pipeline_mode<synchronous>, transform_indices = @transform_5, window_bounds = array<i64: 128, 128>}, {pipeline_mode = #tpu.pipeline_mode<synchronous>, transform_indices = @transform_6, window_bounds = array<i64: 1, 128>}, {pipeline_mode = #tpu.pipeline_mode<synchronous>, transform_indices = @transform_7, window_bounds = array<i64: 128, 128>}, {pipeline_mode = #tpu.pipeline_mode<synchronous>, transform_indices = @transform_8, window_bounds = array<i64: 1, 128>}, {transform_indices = @transform_9, window_bounds = array<i64: 8, 128>}]} {
    %c0 = arith.constant 0 : index
    %c0_0 = arith.constant 0 : index
    %0 = vector.load %arg1[%c0, %c0_0] : memref<8x128xf32, #tpu.memory_space<vmem>>, vector<8x128xf32>
    %c0_1 = arith.constant 0 : index
    %c0_2 = arith.constant 0 : index
    %1 = vector.load %arg2[%c0_1, %c0_2] : memref<128x128xf32, #tpu.memory_space<vmem>>, vector<128x128xf32>
    %cst = arith.constant dense<0.000000e+00> : vector<8x128xf32>
    %2 = tpu.matmul %0, %1, %cst {dimension_numbers = #tpu.dot_dimension_numbers<[1], [0], [0], [1], [0, 0, 1, 1], [], []>} : vector<8x128xf32>, vector<128x128xf32>, vector<8x128xf32> -> vector<8x128xf32>
    %c0_3 = arith.constant 0 : index
    %c0_4 = arith.constant 0 : index
    %3 = vector.load %arg3[%c0_3, %c0_4] : memref<1x128xf32, #tpu.memory_space<vmem>>, vector<1x128xf32>
    %4 = vector.broadcast %3 : vector<1x128xf32> to vector<8x128xf32>
    %5 = arith.addf %2, %4 : vector<8x128xf32>
    %cst_5 = arith.constant 0.000000e+00 : f32
    %6 = vector.broadcast %cst_5 : f32 to vector<8x128xf32>
    %7 = arith.maximumf %5, %6 : vector<8x128xf32>
    %c0_6 = arith.constant 0 : index
    %c0_7 = arith.constant 0 : index
    %8 = vector.load %arg4[%c0_6, %c0_7] : memref<128x128xf32, #tpu.memory_space<vmem>>, vector<128x128xf32>
    %cst_8 = arith.constant dense<0.000000e+00> : vector<8x128xf32>
    %9 = tpu.matmul %7, %8, %cst_8 {dimension_numbers = #tpu.dot_dimension_numbers<[1], [0], [0], [1], [0, 0, 1, 1], [], []>} : vector<8x128xf32>, vector<128x128xf32>, vector<8x128xf32> -> vector<8x128xf32>
    %c0_9 = arith.constant 0 : index
    %c0_10 = arith.constant 0 : index
    %10 = vector.load %arg5[%c0_9, %c0_10] : memref<1x128xf32, #tpu.memory_space<vmem>>, vector<1x128xf32>
    %11 = vector.broadcast %10 : vector<1x128xf32> to vector<8x128xf32>
    %12 = arith.addf %9, %11 : vector<8x128xf32>
    %cst_11 = arith.constant 0.000000e+00 : f32
    %13 = vector.broadcast %cst_11 : f32 to vector<8x128xf32>
    %14 = arith.maximumf %12, %13 : vector<8x128xf32>
    %c0_12 = arith.constant 0 : index
    %c0_13 = arith.constant 0 : index
    %15 = vector.load %arg6[%c0_12, %c0_13] : memref<128x128xf32, #tpu.memory_space<vmem>>, vector<128x128xf32>
    %cst_14 = arith.constant dense<0.000000e+00> : vector<8x128xf32>
    %16 = tpu.matmul %14, %15, %cst_14 {dimension_numbers = #tpu.dot_dimension_numbers<[1], [0], [0], [1], [0, 0, 1, 1], [], []>} : vector<8x128xf32>, vector<128x128xf32>, vector<8x128xf32> -> vector<8x128xf32>
    %c0_15 = arith.constant 0 : index
    %c0_16 = arith.constant 0 : index
    %17 = vector.load %arg7[%c0_15, %c0_16] : memref<1x128xf32, #tpu.memory_space<vmem>>, vector<1x128xf32>
    %18 = vector.broadcast %17 : vector<1x128xf32> to vector<8x128xf32>
    %19 = arith.addf %16, %18 : vector<8x128xf32>
    %cst_17 = arith.constant 0.000000e+00 : f32
    %20 = vector.broadcast %cst_17 : f32 to vector<8x128xf32>
    %21 = arith.maximumf %19, %20 : vector<8x128xf32>
    %c0_18 = arith.constant 0 : index
    %c0_19 = arith.constant 0 : index
    %22 = vector.load %arg8[%c0_18, %c0_19] : memref<128x128xf32, #tpu.memory_space<vmem>>, vector<128x128xf32>
    %cst_20 = arith.constant dense<0.000000e+00> : vector<8x128xf32>
    %23 = tpu.matmul %21, %22, %cst_20 {dimension_numbers = #tpu.dot_dimension_numbers<[1], [0], [0], [1], [0, 0, 1, 1], [], []>} : vector<8x128xf32>, vector<128x128xf32>, vector<8x128xf32> -> vector<8x128xf32>
    %c0_21 = arith.constant 0 : index
    %c0_22 = arith.constant 0 : index
    %24 = vector.load %arg9[%c0_21, %c0_22] : memref<1x128xf32, #tpu.memory_space<vmem>>, vector<1x128xf32>
    %25 = vector.broadcast %24 : vector<1x128xf32> to vector<8x128xf32>
    %26 = arith.addf %23, %25 : vector<8x128xf32>
    %27 = math.tanh %26 : vector<8x128xf32>
    %c0_23 = arith.constant 0 : index
    %c0_24 = arith.constant 0 : index
    %28 = vector.load %arg10[%c0_23, %c0_24] : memref<8x128xf32, #tpu.memory_space<vmem>>, vector<8x128xf32>
    tpu.vector_store %arg10[%c0_23, %c0_24], %27 {strides = array<i32>} : memref<8x128xf32, #tpu.memory_space<vmem>>, vector<8x128xf32>,
    return
  }
  func.func @transform_0(%arg0: i32) -> (i32, i32) {
    %c0_i32 = arith.constant 0 : i32
    %c0_i32_0 = arith.constant 0 : i32
    return %arg0, %c0_i32 : i32, i32
  }
  func.func @transform_1(%arg0: i32) -> (i32, i32) {
    %c0_i32 = arith.constant 0 : i32
    %c0_i32_0 = arith.constant 0 : i32
    %c0_i32_1 = arith.constant 0 : i32
    return %c0_i32, %c0_i32_0 : i32, i32
  }
  func.func @transform_2(%arg0: i32) -> (i32, i32) {
    %c0_i32 = arith.constant 0 : i32
    %c0_i32_0 = arith.constant 0 : i32
    %c0_i32_1 = arith.constant 0 : i32
    return %c0_i32, %c0_i32_0 : i32, i32
  }
  func.func @transform_3(%arg0: i32) -> (i32, i32) {
    %c0_i32 = arith.constant 0 : i32
    %c0_i32_0 = arith.constant 0 : i32
    %c0_i32_1 = arith.constant 0 : i32
    return %c0_i32, %c0_i32_0 : i32, i32
  }
  func.func @transform_4(%arg0: i32) -> (i32, i32) {
    %c0_i32 = arith.constant 0 : i32
    %c0_i32_0 = arith.constant 0 : i32
    %c0_i32_1 = arith.constant 0 : i32
    return %c0_i32, %c0_i32_0 : i32, i32
  }
  func.func @transform_5(%arg0: i32) -> (i32, i32) {
    %c0_i32 = arith.constant 0 : i32
    %c0_i32_0 = arith.constant 0 : i32
    %c0_i32_1 = arith.constant 0 : i32
    return %c0_i32, %c0_i32_0 : i32, i32
  }
  func.func @transform_6(%arg0: i32) -> (i32, i32) {
    %c0_i32 = arith.constant 0 : i32
    %c0_i32_0 = arith.constant 0 : i32
    %c0_i32_1 = arith.constant 0 : i32
    return %c0_i32, %c0_i32_0 : i32, i32
  }
  func.func @transform_7(%arg0: i32) -> (i32, i32) {
    %c0_i32 = arith.constant 0 : i32
    %c0_i32_0 = arith.constant 0 : i32
    %c0_i32_1 = arith.constant 0 : i32
    return %c0_i32, %c0_i32_0 : i32, i32
  }
  func.func @transform_8(%arg0: i32) -> (i32, i32) {
    %c0_i32 = arith.constant 0 : i32
    %c0_i32_0 = arith.constant 0 : i32
    %c0_i32_1 = arith.constant 0 : i32
    return %c0_i32, %c0_i32_0 : i32, i32
  }
  func.func @transform_9(%arg0: i32) -> (i32, i32) {
    %c0_i32 = arith.constant 0 : i32
    %c0_i32_0 = arith.constant 0 : i32
    return %arg0, %c0_i32 : i32, i32
  }
}

</mosaic_0001>

<bundles_post_ra>
// kernel: actor_forward.1
= control target key start
LH: loop header
LB: loop body
LE: loop exit
PB: predicated region body
PF: predicated region fallthrough
CT: control target
= control target key end

     0   :  { %14 = vsyncpa [#allocation3], 0  ;;  %s1076_s0 = inlined_call_operand.vmem [shape: f32[8,128], index: 0, kind: input, shape index: {}]   ;;  %s1077_s1 = inlined_call_operand.hbm [shape: f32[128,128], index: 1, kind: input, shape index: {}]   ;;  %s1078_s2 = inlined_call_operand.vmem [shape: f32[1,128], index: 2, kind: input, shape index: {}]   ;;  %s1079_s3 = inlined_call_operand.hbm [shape: f32[128,128], index: 3, kind: input, shape index: {}]   ;;  %s1080_s4 = inlined_call_operand.vmem [shape: f32[1,128], index: 4, kind: input, shape index: {}]   ;;  %s1081_s5 = inlined_call_operand.hbm [shape: f32[128,128], index: 5, kind: input, shape index: {}]   ;;  %s1082_s6 = inlined_call_operand.vmem [shape: f32[1,128], index: 6, kind: input, shape index: {}]   ;;  %s1083_s7 = inlined_call_operand.hbm [shape: f32[128,128], index: 7, kind: input, shape index: {}]   ;;  %s1084_s8 = inlined_call_operand.vmem [shape: f32[1,128], index: 8, kind: input, shape index: {}]   ;;  %s1085_s9 = inlined_call_operand.vmem [shape: f32[8,128], index: 9, kind: output, shape index: {}]  }
   0x1   :  { %15 = vsyncpa [#allocation5], 0 }
   0x2   :  { %16 = vsyncpa [#allocation8], 0  ;;  %s885_s30 = smov [#allocation4]   ;;  %s886_s11 = smov [#allocation2]  }
   0x3   :  { %s38_s10 = sshll.u32 %s885_s30, 4  ;;  %s24_s12 = sshll.u32 %s886_s11, 4  ;;  %s39_s10 = int_to_ptr.vmem [resolvable:$true] %s38_s10  ;;  %s944_s12 = int_to_ptr.vmem [resolvable:$true] %s24_s12 }
   0x4   :  { %s791_s15 = scalar_lea.hbm %s1079_s3, 2048 }
   0x5   :  { %p792_p0 = scmp.ne.s32.totalorder %s1079_s3, %s791_s15  ;;  %p795_p1 = scmp.lt.u32.totalorder %s791_s15, %s1079_s3 }
   0x7   :  { %p797_p2 = pnand %p795_p1, %p792_p0 }
   0x9   :  { %800 = shalt.err (!%p797_p2)
}
   0xa   :  { %s801_s20 = scalar_lea.vmem %s39_s10, 2048  ;;  %p806_p4 = scmp.lt.s32.totalorder %s39_s10, %s39_s10 }
   0xb   :  { %p802_p3 = scmp.ne.s32.totalorder %s39_s10, %s801_s20  ;;  %p807_p5 = scmp.lt.s32.totalorder %s801_s20, %s801_s20 }
   0xd   :  { %p808_p6 = por %p807_p5, %p806_p4 }
   0xf   :  { %p809_p7 = pnand %p808_p6, %p802_p3 }
  0x11   :  { %812 = shalt.err (!%p809_p7)
}
  0x12   :  { %s887_s21 = smov 128   ;;  %s888_s22 = smov 8  }
  0x13   :  { %44 = dma.hbm_to_vmem [thread:$0]  %s1079_s3, 2048, %s39_s10, [#allocation5], %s887_s21, %s887_s21, %s888_s22  }
  0x14   :  { %s813_s27 = scalar_lea.hbm %s1077_s1, 2048 }
  0x15   :  { %p814_p8 = scmp.ne.s32.totalorder %s1077_s1, %s813_s27  ;;  %p817_p9 = scmp.lt.u32.totalorder %s813_s27, %s1077_s1 }
  0x17   :  { %p819_p10 = pnand %p817_p9, %p814_p8 }
  0x19   :  { %822 = shalt.err (!%p819_p10)
}
  0x1a   :  { %s823_s13 = scalar_lea.vmem %s944_s12, 2048  ;;  %p828_p12 = scmp.lt.s32.totalorder %s944_s12, %s944_s12 }
  0x1b   :  { %p824_p11 = scmp.ne.s32.totalorder %s944_s12, %s823_s13  ;;  %p829_p13 = scmp.lt.s32.totalorder %s823_s13, %s823_s13 }
  0x1d   :  { %p830_p0 = por %p829_p13, %p828_p12 }
  0x1f   :  { %p831_p1 = pnand %p830_p0, %p824_p11 }
  0x21   :  { %834 = shalt.err (!%p831_p1)
}
  0x22   :  { %30 = dma.hbm_to_vmem [thread:$0]  %s1077_s1, 2048, %s944_s12, [#allocation3], %s887_s21, %s887_s21, %s888_s22  }
  0x23   :  { %s889_s14 = smov [#allocation6]   ;;  %s890_s16 = smov [#allocation7]  }
  0x24   :  { %s52_s15 = sshll.u32 %s889_s14, 4  ;;  %s66_s17 = sshll.u32 %s890_s16, 4  ;;  %s53_s15 = int_to_ptr.vmem [resolvable:$true] %s52_s15  ;;  %s981_s17 = int_to_ptr.vmem [resolvable:$true] %s66_s17 }
  0x25   :  { %s835_s20 = scalar_lea.hbm %s1081_s5, 2048 }
  0x26   :  { %p836_p2 = scmp.ne.s32.totalorder %s1081_s5, %s835_s20  ;;  %p839_p3 = scmp.lt.u32.totalorder %s835_s20, %s1081_s5 }
  0x28   :  { %p841_p4 = pnand %p839_p3, %p836_p2 }
  0x2a   :  { %844 = shalt.err (!%p841_p4)
}
  0x2b   :  { %s845_s1 = scalar_lea.vmem %s53_s15, 2048  ;;  %p850_p6 = scmp.lt.s32.totalorder %s53_s15, %s53_s15 }
  0x2c   :  { %p846_p5 = scmp.ne.s32.totalorder %s53_s15, %s845_s1  ;;  %p851_p7 = scmp.lt.s32.totalorder %s845_s1, %s845_s1 }
  0x2e   :  { %p852_p8 = por %p851_p7, %p850_p6 }
  0x30   :  { %p853_p9 = pnand %p852_p8, %p846_p5 }
  0x32   :  { %856 = shalt.err (!%p853_p9)
}
  0x33   :  { %58 = dma.hbm_to_vmem [thread:$0]  %s1081_s5, 2048, %s53_s15, [#allocation5], %s887_s21, %s887_s21, %s888_s22  }
  0x34   :  { %s857_s30 = scalar_lea.hbm %s1083_s7, 2048 }
  0x35   :  { %p858_p10 = scmp.ne.s32.totalorder %s1083_s7, %s857_s30  ;;  %p861_p11 = scmp.lt.u32.totalorder %s857_s30, %s1083_s7 }
  0x37   :  { %p863_p12 = pnand %p861_p11, %p858_p10 }
  0x39   :  { %866 = shalt.err (!%p863_p12)
}
  0x3a   :  { %s867_s14 = scalar_lea.vmem %s981_s17, 2048  ;;  %p872_p0 = scmp.lt.s32.totalorder %s981_s17, %s981_s17 }
  0x3b   :  { %p868_p13 = scmp.ne.s32.totalorder %s981_s17, %s867_s14  ;;  %p873_p1 = scmp.lt.s32.totalorder %s867_s14, %s867_s14 }
  0x3d   :  { %p874_p2 = por %p873_p1, %p872_p0 }
  0x3f   :  { %p875_p3 = pnand %p874_p2, %p868_p13 }
  0x41   :  { %878 = shalt.err (!%p875_p3)
}
  0x42   :  { %72 = dma.hbm_to_vmem [thread:$0]  %s1083_s7, 2048, %s981_s17, [#allocation8], %s887_s21, %s887_s21, %s888_s22  }
  0x43   :  { %879 = dma.done.wait [#allocation3], 2048  }
  0x44   :  { %880 = vsyncadd [#allocation3], 4294965248 }
  0x45   :  { %881 = dma.done.wait [#allocation5], 4096  }
  0x46   :  { %882 = vsyncadd [#allocation5], 4294963200 }
  0x47   :  { %883 = dma.done.wait [#allocation8], 2048  }
  0x48   :  { %884 = vsyncadd [#allocation8], 4294965248  ;;  %v891_v0 = vmov 0.0|0.0   ;;  %vm892_vm0 = vmmov 0   ;;  %v893_v1 = vmov 0.0   ;;  %v88_v2 = vld [vmem:[#allocation2] sm:$0xff] }
  0x49   :  { %684 = vmatprep.subr.bf16.mxu0 %v891_v0  ;;  %576 = vmatprep.mubr.msk.f32.mxu0 %vm892_vm0, %v893_v1  ;;  %v89_v3 = vld [vmem:[#allocation2 + $0x8] sm:$0xff]  ;;  %v90_v4 = vld [vmem:[#allocation2 + $0x10] sm:$0xff]  ;;  %v91_v6 = vld [vmem:[#allocation2 + $0x18] sm:$0xff] }
  0x4a   :  { %708 = vmatprep.subr.bf16.mxu1 %v891_v0  ;;  %611 = vmatprep.mubr.msk.f32.mxu1 %vm892_vm0, %v893_v1  ;;  %v685_v5 = vpack.c.bf16 %v89_v3, %v88_v2  ;;  %v688_v7 = vpack.c.bf16 %v91_v6, %v90_v4  ;;  %v92_v8 = vld [vmem:[#allocation2 + $0x20] sm:$0xff]  ;;  %v93_v9 = vld [vmem:[#allocation2 + $0x28] sm:$0xff]  ;;  %v184_v12 = vld [vmem:[#allocation4 + $0x10] sm:$0xff] }
  0x4b   :  { %v182_v10 = vld [vmem:[#allocation4] sm:$0xff]  ;;  %v183_v11 = vld [vmem:[#allocation4 + $0x8] sm:$0xff]  ;;  %v185_v13 = vld [vmem:[#allocation4 + $0x18] sm:$0xff]  ;;  %v691_v14 = vpack.c.bf16 %v93_v9, %v92_v8 }
  0x4c   :  { %686 = vmatpush3.bf16.msra.mxu0 %v685_v5  ;;  %v709_v15 = vpack.c.bf16 %v183_v11, %v182_v10  ;;  %v94_v16 = vld [vmem:[#allocation2 + $0x30] sm:$0xff]  ;;  %v95_v17 = vld [vmem:[#allocation2 + $0x38] sm:$0xff]  ;;  %v712_v18 = vpack.c.bf16 %v185_v13, %v184_v12  ;;  %v186_v19 = vld [vmem:[#allocation4 + $0x20] sm:$0xff] }
  0x4d   :  { %687 = vmatprep.subr.bf16.mxu0 %v891_v0  ;;  %v187_v20 = vld [vmem:[#allocation4 + $0x28] sm:$0xff]  ;;  %v694_v21 = vpack.c.bf16 %v95_v17, %v94_v16  ;;  %v96_v22 = vld [vmem:[#allocation2 + $0x40] sm:$0xff]  ;;  %v188_v25 = vld [vmem:[#allocation4 + $0x30] sm:$0xff] }
  0x4e   :  { %710 = vmatpush3.bf16.msra.mxu1 %v709_v15  ;;  %v97_v23 = vld [vmem:[#allocation2 + $0x48] sm:$0xff]  ;;  %v715_v24 = vpack.c.bf16 %v187_v20, %v186_v19  ;;  %v189_v26 = vld [vmem:[#allocation4 + $0x38] sm:$0xff]  ;;  %v98_v28 = vld [vmem:[#allocation2 + $0x50] sm:$0xff] }
  0x4f   :  { %711 = vmatprep.subr.bf16.mxu1 %v891_v0  ;;  %v697_v27 = vpack.c.bf16 %v97_v23, %v96_v22  ;;  %v99_v29 = vld [vmem:[#allocation2 + $0x58] sm:$0xff]  ;;  %v718_v30 = vpack.c.bf16 %v189_v26, %v188_v25  ;;  %v190_v31 = vld [vmem:[#allocation4 + $0x40] sm:$0xff]  ;;  %v191_v32 = vld [vmem:[#allocation4 + $0x48] sm:$0xff] }
  0x50   :  { %689 = vmatpush3.bf16.msra.mxu0 %v688_v7  ;;  %v700_v33 = vpack.c.bf16 %v99_v29, %v98_v28  ;;  %v100_v34 = vld [vmem:[#allocation2 + $0x60] sm:$0xff]  ;;  %v101_v35 = vld [vmem:[#allocation2 + $0x68] sm:$0xff]  ;;  %v721_v36 = vpack.c.bf16 %v191_v32, %v190_v31  ;;  %v192_v37 = vld [vmem:[#allocation4 + $0x50] sm:$0xff] }
  0x51   :  { %690 = vmatprep.subr.bf16.mxu0 %v891_v0  ;;  %v193_v38 = vld [vmem:[#allocation4 + $0x58] sm:$0xff]  ;;  %v703_v39 = vpack.c.bf16 %v101_v35, %v100_v34  ;;  %v102_v40 = vld [vmem:[#allocation2 + $0x70] sm:$0xff]  ;;  %v194_v43 = vld [vmem:[#allocation4 + $0x60] sm:$0xff] }
  0x52   :  { %713 = vmatpush3.bf16.msra.mxu1 %v712_v18  ;;  %v103_v41 = vld [vmem:[#allocation2 + $0x78] sm:$0xff]  ;;  %v724_v42 = vpack.c.bf16 %v193_v38, %v192_v37  ;;  %v195_v44 = vld [vmem:[#allocation4 + $0x68] sm:$0xff]  ;;  %v87_v47 = vld [vmem:[%s1076_s0] sm:$0xff] }
  0x53   :  { %714 = vmatprep.subr.bf16.mxu1 %v891_v0  ;;  %v706_v45 = vpack.c.bf16 %v103_v41, %v102_v40  ;;  %v727_v46 = vpack.c.bf16 %v195_v44, %v194_v43  ;;  %v196_v48 = vld [vmem:[#allocation4 + $0x70] sm:$0xff]  ;;  %v197_v49 = vld [vmem:[#allocation4 + $0x78] sm:$0xff]  ;;  %v276_v51 = vld [vmem:[#allocation6] sm:$0xff] }
  0x54   :  { %692 = vmatpush3.bf16.msra.mxu0 %v691_v14  ;;  %v730_v50 = vpack.c.bf16 %v197_v49, %v196_v48  ;;  %v277_v52 = vld [vmem:[#allocation6 + $0x8] sm:$0xff]  ;;  %v278_v53 = vld [vmem:[#allocation6 + $0x10] sm:$0xff]  ;;  %v279_v55 = vld [vmem:[#allocation6 + $0x18] sm:$0xff] }
  0x55   :  { %693 = vmatprep.subr.bf16.mxu0 %v891_v0  ;;  %v733_v54 = vpack.c.bf16 %v277_v52, %v276_v51  ;;  %v736_v56 = vpack.c.bf16 %v279_v55, %v278_v53  ;;  %v280_v57 = vld [vmem:[#allocation6 + $0x20] sm:$0xff]  ;;  %v281_v58 = vld [vmem:[#allocation6 + $0x28] sm:$0xff]  ;;  %v282_v60 = vld [vmem:[#allocation6 + $0x30] sm:$0xff] }
  0x56   :  { %716 = vmatpush3.bf16.msra.mxu1 %v715_v24  ;;  %v739_v59 = vpack.c.bf16 %v281_v58, %v280_v57  ;;  %v283_v61 = vld [vmem:[#allocation6 + $0x38] sm:$0xff]  ;;  %v284_v63 = vld [vmem:[#allocation6 + $0x40] sm:$0xff]  ;;  %v285_v2 = vld [vmem:[#allocation6 + $0x48] sm:$0xff] }
  0x57   :  { %717 = vmatprep.subr.bf16.mxu1 %v891_v0  ;;  %v742_v62 = vpack.c.bf16 %v283_v61, %v282_v60  ;;  %v745_v3 = vpack.c.bf16 %v285_v2, %v284_v63  ;;  %v286_v4 = vld [vmem:[#allocation6 + $0x50] sm:$0xff]  ;;  %v287_v5 = vld [vmem:[#allocation6 + $0x58] sm:$0xff]  ;;  %v288_v7 = vld [vmem:[#allocation6 + $0x60] sm:$0xff] }
  0x58   :  { %695 = vmatpush3.bf16.msra.mxu0 %v694_v21  ;;  %v748_v6 = vpack.c.bf16 %v287_v5, %v286_v4  ;;  %v289_v8 = vld [vmem:[#allocation6 + $0x68] sm:$0xff]  ;;  %v472_v10 = vld [vmem:[%s1078_s2] ss:$0 sm:$0xff]  ;;  %v290_v15 = vld [vmem:[#allocation6 + $0x70] sm:$0xff] }
  0x59   :  { %696 = vmatprep.subr.bf16.mxu0 %v891_v0  ;;  %v751_v9 = vpack.c.bf16 %v289_v8, %v288_v7  ;;  %v291_v16 = vld [vmem:[#allocation6 + $0x78] sm:$0xff]  ;;  %v370_v18 = vld [vmem:[#allocation7] sm:$0xff]  ;;  %v371_v19 = vld [vmem:[#allocation7 + $0x8] sm:$0xff] }
  0x5a   :  { %719 = vmatpush3.bf16.msra.mxu1 %v718_v30  ;;  %v754_v17 = vpack.c.bf16 %v291_v16, %v290_v15  ;;  %v372_v20 = vld [vmem:[#allocation7 + $0x10] sm:$0xff]  ;;  %v757_v21 = vpack.c.bf16 %v371_v19, %v370_v18  ;;  %v373_v22 = vld [vmem:[#allocation7 + $0x18] sm:$0xff]  ;;  %v374_v24 = vld [vmem:[#allocation7 + $0x20] sm:$0xff] }
  0x5b   :  { %720 = vmatprep.subr.bf16.mxu1 %v891_v0  ;;  %v760_v23 = vpack.c.bf16 %v373_v22, %v372_v20  ;;  %v375_v25 = vld [vmem:[#allocation7 + $0x28] sm:$0xff]  ;;  %v378_v29 = vld [vmem:[#allocation7 + $0x40] sm:$0xff]  ;;  %v380_v32 = vld [vmem:[#allocation7 + $0x50] sm:$0xff] }
  0x5c   :  { %698 = vmatpush3.bf16.msra.mxu0 %v697_v27  ;;  %v763_v26 = vpack.c.bf16 %v375_v25, %v374_v24  ;;  %v377_v27 = vld [vmem:[#allocation7 + $0x38] sm:$0xff]  ;;  %v379_v30 = vld [vmem:[#allocation7 + $0x48] sm:$0xff]  ;;  %v382_v35 = vld [vmem:[#allocation7 + $0x60] sm:$0xff] }
  0x5d   :  { %699 = vmatprep.subr.bf16.mxu0 %v891_v0  ;;  %v769_v31 = vpack.c.bf16 %v379_v30, %v378_v29  ;;  %v473_v38 = vld [vmem:[%s1080_s4] ss:$0 sm:$0xff]  ;;  %v384_v43 = vld [vmem:[#allocation7 + $0x70] sm:$0xff]  ;;  %v385_v44 = vld [vmem:[#allocation7 + $0x78] sm:$0xff] }
  0x5e   :  { %722 = vmatpush3.bf16.msra.mxu1 %v721_v36  ;;  %v383_v36 = vld [vmem:[#allocation7 + $0x68] sm:$0xff] }
  0x5f   :  { %723 = vmatprep.subr.bf16.mxu1 %v891_v0  ;;  %v775_v37 = vpack.c.bf16 %v383_v36, %v382_v35 }
  0x60   :  { %701 = vmatpush3.bf16.msra.mxu0 %v700_v33  ;;  %v381_v33 = vld [vmem:[#allocation7 + $0x58] sm:$0xff] }
  0x61   :  { %702 = vmatprep.subr.bf16.mxu0 %v891_v0  ;;  %v772_v34 = vpack.c.bf16 %v381_v33, %v380_v32 }
  0x62   :  { %725 = vmatpush3.bf16.msra.mxu1 %v724_v42 }
  0x63   :  { %726 = vmatprep.subr.bf16.mxu1 %v891_v0 }
  0x64   :  { %704 = vmatpush3.bf16.msra.mxu0 %v703_v39 }
  0x65   :  { %705 = vmatprep.subr.bf16.mxu0 %v891_v0 }
  0x66   :  { %728 = vmatpush3.bf16.msra.mxu1 %v727_v46  ;;  %v474_v46 = vld [vmem:[%s1082_s6] ss:$0 sm:$0xff] }
  0x67   :  { %729 = vmatprep.subr.bf16.mxu1 %v891_v0 }
  0x68   :  { %707 = vmatpush3.bf16.msra.mxu0 %v706_v45  ;;  %v778_v45 = vpack.c.bf16 %v385_v44, %v384_v43 }
  0x69   :  { %732 = vmatprep.subr.bf16.mxu0 %v891_v0 }
  0x6a   :  { %731 = vmatpush3.bf16.msra.mxu1 %v730_v50  ;;  %v475_v50 = vld [vmem:[%s1084_s8] ss:$0 sm:$0xff] }
  0x6b   :  { %577 = vmatmul.mubr.f32.vlgmr.msra.gmra.mrb[0].mxu0 %v87_v47  ;;  %756 = vmatprep.subr.bf16.mxu1 %v891_v0 }
  0x6c   :  { %646 = vmatprep.mubr.msk.f32.mxu0 %vm892_vm0, %v893_v1  ;;  %734 = vmatpush3.bf16.msra.mxu0 %v733_v54 }
  0x6d   :  { %735 = vmatprep.subr.bf16.mxu0 %v891_v0 }
  0x70   :  { %737 = vmatpush3.bf16.msra.mxu0 %v736_v56 }
  0x71   :  { %738 = vmatprep.subr.bf16.mxu0 %v891_v0 }
  0x74   :  { %740 = vmatpush3.bf16.msra.mxu0 %v739_v59 }
  0x75   :  { %741 = vmatprep.subr.bf16.mxu0 %v891_v0 }
  0x78   :  { %743 = vmatpush3.bf16.msra.mxu0 %v742_v62 }
  0x79   :  { %744 = vmatprep.subr.bf16.mxu0 %v891_v0 }
  0x7c   :  { %746 = vmatpush3.bf16.msra.mxu0 %v745_v3 }
  0x7d   :  { %747 = vmatprep.subr.bf16.mxu0 %v891_v0 }
  0x80   :  { %749 = vmatpush3.bf16.msra.mxu0 %v748_v6 }
  0x81   :  { %750 = vmatprep.subr.bf16.mxu0 %v891_v0 }
  0x84   :  { %752 = vmatpush3.bf16.msra.mxu0 %v751_v9 }
  0x85   :  { %753 = vmatprep.subr.bf16.mxu0 %v891_v0 }
  0x88   :  { %755 = vmatpush3.bf16.msra.mxu0 %v754_v17 }
 0x13e   :  { %v177_v11 = vpop.f32.mrb[0].mxu0 }
 0x13f   :  { %v178_v12 = vadd.f32 %v472_v10, %v177_v11  ;;  %v578_v13 = vpop.f32.mrb[1].mxu0 }
 0x141   :  { %v181_v14 = vmax.f32 %v178_v12, 0.0 }
 0x143   :  { %612 = vmatmul.mubr.f32.vlgmr.msra.gmra.mrb[0].mxu1 %v181_v14 }
 0x144   :  { %681 = vmatprep.mubr.msk.f32.mxu1 %vm892_vm0, %v893_v1  ;;  %758 = vmatpush3.bf16.msra.mxu1 %v757_v21  ;;  %v376_v1 = vld [vmem:[#allocation7 + $0x30] sm:$0xff] }
 0x145   :  { %759 = vmatprep.subr.bf16.mxu1 %v891_v0  ;;  %v766_v28 = vpack.c.bf16 %v377_v27, %v376_v1 }
 0x148   :  { %761 = vmatpush3.bf16.msra.mxu1 %v760_v23 }
 0x149   :  { %762 = vmatprep.subr.bf16.mxu1 %v891_v0 }
 0x14c   :  { %764 = vmatpush3.bf16.msra.mxu1 %v763_v26 }
 0x14d   :  { %765 = vmatprep.subr.bf16.mxu1 %v891_v0 }
 0x150   :  { %767 = vmatpush3.bf16.msra.mxu1 %v766_v28 }
 0x151   :  { %768 = vmatprep.subr.bf16.mxu1 %v891_v0 }
 0x154   :  { %770 = vmatpush3.bf16.msra.mxu1 %v769_v31 }
 0x155   :  { %771 = vmatprep.subr.bf16.mxu1 %v891_v0 }
 0x158   :  { %773 = vmatpush3.bf16.msra.mxu1 %v772_v34 }
 0x159   :  { %774 = vmatprep.subr.bf16.mxu1 %v891_v0 }
 0x15c   :  { %776 = vmatpush3.bf16.msra.mxu1 %v775_v37 }
 0x15d   :  { %777 = vmatprep.subr.bf16.mxu1 %v891_v0 }
 0x160   :  { %779 = vmatpush3.bf16.msra.mxu1 %v778_v45 }
 0x216   :  { %v271_v39 = vpop.f32.mrb[0].mxu1 }
 0x217   :  { %v272_v40 = vadd.f32 %v473_v38, %v271_v39  ;;  %v613_v41 = vpop.f32.mrb[1].mxu1 }
 0x219   :  { %v275_v42 = vmax.f32 %v272_v40, 0.0 }
 0x21b   :  { %647 = vmatmul.mubr.f32.vlgmr.msra.gmra.mrb[2].mxu0 %v275_v42 }
 0x2ee   :  { %v365_v47 = vpop.f32.mrb[2].mxu0 }
 0x2ef   :  { %v366_v48 = vadd.f32 %v474_v46, %v365_v47  ;;  %v648_v0 = vpop.f32.mrb[3].mxu0 }
 0x2f1   :  { %v369_v49 = vmax.f32 %v366_v48, 0.0 }
 0x2f3   :  { %682 = vmatmul.mubr.f32.vlgmr.msra.gmra.mrb[2].mxu1 %v369_v49 }
 0x3c6   :  { %v459_v51 = vpop.f32.mrb[2].mxu1 }
 0x3c7   :  { %v460_v52 = vadd.f32 %v475_v50, %v459_v51  ;;  %v683_v53 = vpop.f32.mrb[3].mxu1 }
 0x3c9   :  { %789 = vtanh.f32 %v460_v52 }
 0x3d3   :  { %v790_v54 = vpop.eup %789 }
 0x3d4   :  { %464 = vst [vmem:[%s1085_s9] sm:$0xff] %v790_v54 }
 0x3d5   :  { %469 = vsyncpa [#allocation3], 1 }
 0x3d6   :  { %470 = vsyncpa [#allocation5], 1 }
 0x3d7   :  { %471 = vsyncpa [#allocation8], 1 }

</bundles_post_ra>
